<compile_context>
chip_gen: v7x
topology: tpu7x:2x2x1
jax: 0.10.0
libtpu: 0.0.40
codegen_flags: <defaults>
</compile_context>

<pallas_src>
import jax
import jax.numpy as jnp
from jax import lax
from jax.experimental import pallas as pl
from jax.experimental.pallas import tpu as pltpu

# Hyper-parameters that in the original script come from argparse (deterministic here).
NUM_GROUPS = 3
TIME = 4          # args.time
GAMMA = 0.9       # args.gamma
EDIT_BIAS = 0.5   # edit_bias (fc1.bias filled with this value)
TEMP = 1.0        # args.temp  (gumbel_sigmoid ignores the `temp` forward arg)


def graph_aug_kernel(x_ref, w_ref, noise_ref, vs_ref, r_ref):
    # x_ref:     [G*B, N]  groups stacked along rows (group-major), f32
    # w_ref:     [N, N]    transition matrix W, bf16 (cast once in the wrapper)
    # noise_ref: [B, N]    pre-sampled gumbel noise, f32
    # vs_ref:    [G*B, 1]  per-(group, sample) value (reshaped to [B, G] outside)
    # r_ref:     [B, N]    output gate R

    # fc1(zeros) == bias == EDIT_BIAS everywhere (weights multiply a zero input).
    logits = EDIT_BIAS + noise_ref[...]
    if TEMP != 1.0:                      # folded away at trace time when TEMP == 1.0
        logits = logits / TEMP
    R = jax.nn.sigmoid(logits)
    r_ref[...] = R

    # Broadcast R across the 3 stacked groups: [B, N] -> [G*B, N] (sublane concat).
    R_all = jnp.concatenate([R] * NUM_GROUPS, axis=0)

    s = x_ref[...]                                           # [G*B, N] f32
    vg = jnp.zeros((s.shape[0], 1), jnp.float32)             # [G*B, 1]

    for i in range(TIME):                # static unroll (args.time iterations)
        sR = s * R_all                                       # reused product
        vg = vg + (GAMMA ** i) * jnp.sum(sR, axis=-1, keepdims=True)
        s = s - sR
        # s @ W.T without materializing a transpose: contract dim 1 with dim 1.
        logit = lax.dot_general(
            s.astype(jnp.bfloat16), w_ref[...],
            dimension_numbers=(((1,), (1,)), ((), ())),
            preferred_element_type=jnp.float32)              # [G*B, N] f32 on MXU
        # Faithful to PyTorch: denominator is the SIGNED sum (fragile if W/s mix signs).
        den = jnp.sum(logit, axis=-1, keepdims=True)         # [G*B, 1]
        s = jnp.abs(logit) * pl.reciprocal(den, approx=True)

    vs_ref[...] = vg


def graph_augmentation(x_stack, W, gumbel_noise):
    """x_stack: [G, B, N] float32; W: [N, N] float32; gumbel_noise: [B, N] float32."""
    G, B, N = x_stack.shape
    GB = G * B

    x_flat = x_stack.reshape(GB, N)            # stack groups into one MXU operand
    w_bf16 = W.astype(jnp.bfloat16)            # one-time cast: halves W's kernel DMA

    flops = TIME * 2 * GB * N * N                              # 4 stacked matmuls
    transcendentals = B * N + TIME * GB                        # sigmoid + approx recips
    bytes_accessed = (x_flat.size * 4 + w_bf16.size * 2 +
                      gumbel_noise.size * 4 + GB * 4 + B * N * 4)

    vs_raw, R = pl.pallas_call(
        graph_aug_kernel,
        out_shape=(
            jax.ShapeDtypeStruct((GB, 1), jnp.float32),   # per-(group, sample) values
            jax.ShapeDtypeStruct((B, N), jnp.float32),    # R
        ),
        grid=(1,),
        in_specs=[
            pl.BlockSpec((GB, N), lambda i: (0, 0)),
            pl.BlockSpec((N, N), lambda i: (0, 0)),
            pl.BlockSpec((B, N), lambda i: (0, 0)),
        ],
        out_specs=(
            pl.BlockSpec((GB, 1), lambda i: (0, 0)),
            pl.BlockSpec((B, N), lambda i: (0, 0)),
        ),
        compiler_params=pltpu.CompilerParams(
            dimension_semantics=("arbitrary",)),
        cost_estimate=pl.CostEstimate(
            flops=flops,
            transcendentals=transcendentals,
            bytes_accessed=bytes_accessed),
    )(x_flat, w_bf16, gumbel_noise)

    # Layout plumbing outside the kernel: [G*B, 1] -> [G, B] -> [B, G]
    vs = vs_raw.reshape(G, B).T
    return vs, R


def graph_augmentation_ref(x_stack, W, gumbel_noise):
    """Pure-JAX reference mirroring the PyTorch module (for correctness checking)."""
    R = jax.nn.sigmoid((EDIT_BIAS + gumbel_noise) / TEMP)
    vgs = []
    for g in range(NUM_GROUPS):
        s = x_stack[g]
        vg = jnp.zeros((s.shape[0], 1), jnp.float32)
        for i in range(TIME):
            r = jnp.sum(s * R, axis=-1, keepdims=True)
            vg = vg + (GAMMA ** i) * r
            s = s - R * s
            logit = (W @ s.T).T
            s = jnp.abs(logit) / jnp.sum(logit, axis=-1, keepdims=True)
        vgs.append(vg)
    return jnp.concatenate(vgs, axis=-1), R


if __name__ == "__main__":
    key = jax.random.PRNGKey(0)
    B, N = 8, 128                       # batch, num_states (vreg-aligned)

    kx, kw, ku = jax.random.split(key, 3)
    # x1, x2, x3 stacked on leading axis
    x = jax.random.uniform(kx, (NUM_GROUPS, B, N), jnp.float32)
    # W (below_{battery}.npy stand-in): positive entries so sum(logit) != 0
    W = jax.random.uniform(kw, (N, N), jnp.float32) + 0.1

    # gumbel noise = -log(-log(U + eps) + eps), sampled deterministically (glue).
    # TODO(synk): torch.rand-based gumbel sampling has no in-kernel equivalent here;
    # noise is pre-sampled in the wrapper (pltpu.prng_* could be used if needed).
    eps = 1e-20
    U = jax.random.uniform(ku, (B, N), jnp.float32)
    gumbel_noise = -jnp.log(-jnp.log(U + eps) + eps)

    vs, R = graph_augmentation(x, W, gumbel_noise)
    jax.block_until_ready((vs, R))

    vs_ref, R_ref = graph_augmentation_ref(x, W, gumbel_noise)

    assert vs.shape == (B, NUM_GROUPS) and R.shape == (B, N)
    assert jnp.allclose(R, R_ref, rtol=1e-3, atol=1e-4), "R mismatch vs reference"
    assert jnp.allclose(vs, vs_ref, rtol=5e-2, atol=1e-2), "vs mismatch vs reference"
    print("KERNEL_OK")
</pallas_src>

<mosaic_0001>
module attributes {stable_mosaic.version = 11 : i64} {
  func.func @graph_aug_kernel(%arg0: i32, %arg1: memref<24x128xf32, #tpu.memory_space<vmem>>, %arg2: memref<128x128xbf16, #tpu.memory_space<vmem>>, %arg3: memref<8x128xf32, #tpu.memory_space<vmem>>, %arg4: memref<24x1xf32, #tpu.memory_space<vmem>>, %arg5: memref<8x128xf32, #tpu.memory_space<vmem>>) attributes {dimension_semantics = [#tpu.dimension_semantics<arbitrary>], iteration_bounds = array<i64: 1>, scalar_prefetch = 0 : i64, scratch_operands = 0 : i64, tpu.core_type = #tpu.core_type<tc>, window_params = [{pipeline_mode = #tpu.pipeline_mode<synchronous>, transform_indices = @transform_0, window_bounds = array<i64: 24, 128>}, {pipeline_mode = #tpu.pipeline_mode<synchronous>, transform_indices = @transform_1, window_bounds = array<i64: 128, 128>}, {pipeline_mode = #tpu.pipeline_mode<synchronous>, transform_indices = @transform_2, window_bounds = array<i64: 8, 128>}, {pipeline_mode = #tpu.pipeline_mode<synchronous>, transform_indices = @transform_3, window_bounds = array<i64: 24, 1>}, {pipeline_mode = #tpu.pipeline_mode<synchronous>, transform_indices = @transform_4, window_bounds = array<i64: 8, 128>}]} {
    %c0 = arith.constant 0 : index
    %c0_0 = arith.constant 0 : index
    %0 = vector.load %arg3[%c0, %c0_0] : memref<8x128xf32, #tpu.memory_space<vmem>>, vector<8x128xf32>
    %cst = arith.constant 5.000000e-01 : f32
    %1 = vector.broadcast %cst : f32 to vector<8x128xf32>
    %2 = arith.addf %1, %0 : vector<8x128xf32>
    %3 = arith.negf %2 : vector<8x128xf32>
    %4 = math.exp %3 : vector<8x128xf32>
    %cst_1 = arith.constant 1.000000e+00 : f32
    %5 = vector.broadcast %cst_1 : f32 to vector<8x128xf32>
    %6 = arith.addf %5, %4 : vector<8x128xf32>
    %7 = arith.divf %5, %6 : vector<8x128xf32>
    %c0_2 = arith.constant 0 : index
    %c0_3 = arith.constant 0 : index
    %8 = vector.load %arg5[%c0_2, %c0_3] : memref<8x128xf32, #tpu.memory_space<vmem>>, vector<8x128xf32>
    tpu.vector_store %arg5[%c0_2, %c0_3], %7 {strides = array<i32>} : memref<8x128xf32, #tpu.memory_space<vmem>>, vector<8x128xf32>,
    %9 = tpu.concatenate %7, %7, %7 in 0 : vector<8x128xf32>, vector<8x128xf32>, vector<8x128xf32> -> vector<24x128xf32>
    %c0_4 = arith.constant 0 : index
    %c0_5 = arith.constant 0 : index
    %10 = vector.load %arg1[%c0_4, %c0_5] : memref<24x128xf32, #tpu.memory_space<vmem>>, vector<24x128xf32>
    %cst_6 = arith.constant 0.000000e+00 : f32
    %11 = vector.broadcast %cst_6 : f32 to vector<24x1xf32>
    %12 = arith.mulf %10, %9 : vector<24x128xf32>
    %cst_7 = arith.constant dense<0.000000e+00> : vector<24xf32>
    %13 = vector.multi_reduction <add>, %12, %cst_7 [1] : vector<24x128xf32> to vector<24xf32>
    %14 = vector.shape_cast %13 : vector<24xf32> to vector<24x1xf32>
    %cst_8 = arith.constant 1.000000e+00 : f32
    %15 = vector.broadcast %cst_8 : f32 to vector<24x1xf32>
    %16 = arith.mulf %15, %14 : vector<24x1xf32>
    %17 = arith.addf %11, %16 : vector<24x1xf32>
    %18 = arith.subf %10, %12 : vector<24x128xf32>
    %19 = arith.truncf %18 : vector<24x128xf32> to vector<24x128xbf16>
    %c0_9 = arith.constant 0 : index
    %c0_10 = arith.constant 0 : index
    %20 = vector.load %arg2[%c0_9, %c0_10] : memref<128x128xbf16, #tpu.memory_space<vmem>>, vector<128x128xbf16>
    %cst_11 = arith.constant dense<0.000000e+00> : vector<24x128xf32>
    %21 = tpu.matmul %19, %20, %cst_11 {dimension_numbers = #tpu.dot_dimension_numbers<[1], [1], [0], [0], [0, 0, 1, 0], [], []>} : vector<24x128xbf16>, vector<128x128xbf16>, vector<24x128xf32> -> vector<24x128xf32>
    %cst_12 = arith.constant dense<0.000000e+00> : vector<24xf32>
    %22 = vector.multi_reduction <add>, %21, %cst_12 [1] : vector<24x128xf32> to vector<24xf32>
    %23 = vector.shape_cast %22 : vector<24xf32> to vector<24x1xf32>
    %24 = math.absf %21 : vector<24x128xf32>
    %25 = tpu.reciprocal %23 {approx = true} : vector<24x1xf32> -> vector<24x1xf32>
    %26 = vector.broadcast %25 : vector<24x1xf32> to vector<24x128xf32>
    %27 = arith.mulf %24, %26 : vector<24x128xf32>
    %28 = arith.mulf %27, %9 : vector<24x128xf32>
    %cst_13 = arith.constant dense<0.000000e+00> : vector<24xf32>
    %29 = vector.multi_reduction <add>, %28, %cst_13 [1] : vector<24x128xf32> to vector<24xf32>
    %30 = vector.shape_cast %29 : vector<24xf32> to vector<24x1xf32>
    %cst_14 = arith.constant 0.899999976 : f32
    %31 = vector.broadcast %cst_14 : f32 to vector<24x1xf32>
    %32 = arith.mulf %31, %30 : vector<24x1xf32>
    %33 = arith.addf %17, %32 : vector<24x1xf32>
    %34 = arith.subf %27, %28 : vector<24x128xf32>
    %35 = arith.truncf %34 : vector<24x128xf32> to vector<24x128xbf16>
    %c0_15 = arith.constant 0 : index
    %c0_16 = arith.constant 0 : index
    %36 = vector.load %arg2[%c0_15, %c0_16] : memref<128x128xbf16, #tpu.memory_space<vmem>>, vector<128x128xbf16>
    %cst_17 = arith.constant dense<0.000000e+00> : vector<24x128xf32>
    %37 = tpu.matmul %35, %36, %cst_17 {dimension_numbers = #tpu.dot_dimension_numbers<[1], [1], [0], [0], [0, 0, 1, 0], [], []>} : vector<24x128xbf16>, vector<128x128xbf16>, vector<24x128xf32> -> vector<24x128xf32>
    %cst_18 = arith.constant dense<0.000000e+00> : vector<24xf32>
    %38 = vector.multi_reduction <add>, %37, %cst_18 [1] : vector<24x128xf32> to vector<24xf32>
    %39 = vector.shape_cast %38 : vector<24xf32> to vector<24x1xf32>
    %40 = math.absf %37 : vector<24x128xf32>
    %41 = tpu.reciprocal %39 {approx = true} : vector<24x1xf32> -> vector<24x1xf32>
    %42 = vector.broadcast %41 : vector<24x1xf32> to vector<24x128xf32>
    %43 = arith.mulf %40, %42 : vector<24x128xf32>
    %44 = arith.mulf %43, %9 : vector<24x128xf32>
    %cst_19 = arith.constant dense<0.000000e+00> : vector<24xf32>
    %45 = vector.multi_reduction <add>, %44, %cst_19 [1] : vector<24x128xf32> to vector<24xf32>
    %46 = vector.shape_cast %45 : vector<24xf32> to vector<24x1xf32>
    %cst_20 = arith.constant 8.100000e-01 : f32
    %47 = vector.broadcast %cst_20 : f32 to vector<24x1xf32>
    %48 = arith.mulf %47, %46 : vector<24x1xf32>
    %49 = arith.addf %33, %48 : vector<24x1xf32>
    %50 = arith.subf %43, %44 : vector<24x128xf32>
    %51 = arith.truncf %50 : vector<24x128xf32> to vector<24x128xbf16>
    %c0_21 = arith.constant 0 : index
    %c0_22 = arith.constant 0 : index
    %52 = vector.load %arg2[%c0_21, %c0_22] : memref<128x128xbf16, #tpu.memory_space<vmem>>, vector<128x128xbf16>
    %cst_23 = arith.constant dense<0.000000e+00> : vector<24x128xf32>
    %53 = tpu.matmul %51, %52, %cst_23 {dimension_numbers = #tpu.dot_dimension_numbers<[1], [1], [0], [0], [0, 0, 1, 0], [], []>} : vector<24x128xbf16>, vector<128x128xbf16>, vector<24x128xf32> -> vector<24x128xf32>
    %cst_24 = arith.constant dense<0.000000e+00> : vector<24xf32>
    %54 = vector.multi_reduction <add>, %53, %cst_24 [1] : vector<24x128xf32> to vector<24xf32>
    %55 = vector.shape_cast %54 : vector<24xf32> to vector<24x1xf32>
    %56 = math.absf %53 : vector<24x128xf32>
    %57 = tpu.reciprocal %55 {approx = true} : vector<24x1xf32> -> vector<24x1xf32>
    %58 = vector.broadcast %57 : vector<24x1xf32> to vector<24x128xf32>
    %59 = arith.mulf %56, %58 : vector<24x128xf32>
    %60 = arith.mulf %59, %9 : vector<24x128xf32>
    %cst_25 = arith.constant dense<0.000000e+00> : vector<24xf32>
    %61 = vector.multi_reduction <add>, %60, %cst_25 [1] : vector<24x128xf32> to vector<24xf32>
    %62 = vector.shape_cast %61 : vector<24xf32> to vector<24x1xf32>
    %cst_26 = arith.constant 7.290000e-01 : f32
    %63 = vector.broadcast %cst_26 : f32 to vector<24x1xf32>
    %64 = arith.mulf %63, %62 : vector<24x1xf32>
    %65 = arith.addf %49, %64 : vector<24x1xf32>
    %c0_27 = arith.constant 0 : index
    %c0_28 = arith.constant 0 : index
    %66 = vector.load %arg4[%c0_27, %c0_28] : memref<24x1xf32, #tpu.memory_space<vmem>>, vector<24x1xf32>
    tpu.vector_store %arg4[%c0_27, %c0_28], %65 {strides = array<i32>} : memref<24x1xf32, #tpu.memory_space<vmem>>, vector<24x1xf32>,
    return
  }
  func.func @transform_0(%arg0: i32) -> (i32, i32) {
    %c0_i32 = arith.constant 0 : i32
    %c0_i32_0 = arith.constant 0 : i32
    %c0_i32_1 = arith.constant 0 : i32
    return %c0_i32, %c0_i32_0 : i32, i32
  }
  func.func @transform_1(%arg0: i32) -> (i32, i32) {
    %c0_i32 = arith.constant 0 : i32
    %c0_i32_0 = arith.constant 0 : i32
    %c0_i32_1 = arith.constant 0 : i32
    return %c0_i32, %c0_i32_0 : i32, i32
  }
  func.func @transform_2(%arg0: i32) -> (i32, i32) {
    %c0_i32 = arith.constant 0 : i32
    %c0_i32_0 = arith.constant 0 : i32
    %c0_i32_1 = arith.constant 0 : i32
    return %c0_i32, %c0_i32_0 : i32, i32
  }
  func.func @transform_3(%arg0: i32) -> (i32, i32) {
    %c0_i32 = arith.constant 0 : i32
    %c0_i32_0 = arith.constant 0 : i32
    %c0_i32_1 = arith.constant 0 : i32
    return %c0_i32, %c0_i32_0 : i32, i32
  }
  func.func @transform_4(%arg0: i32) -> (i32, i32) {
    %c0_i32 = arith.constant 0 : i32
    %c0_i32_0 = arith.constant 0 : i32
    %c0_i32_1 = arith.constant 0 : i32
    return %c0_i32, %c0_i32_0 : i32, i32
  }
}

</mosaic_0001>

<bundles_post_ra>
// kernel: tpu_custom_call.1
= control target key start
LH: loop header
LB: loop body
LE: loop exit
PB: predicated region body
PF: predicated region fallthrough
CT: control target
= control target key end

     0   :  { %10 = vsyncpa [#allocation3], 0  ;;  %s774_s0 = inlined_call_operand.hbm [shape: f32[24,128], index: 0, kind: input, shape index: {}]   ;;  %s775_s1 = inlined_call_operand.hbm [shape: bf16[128,128], index: 1, kind: input, shape index: {}]   ;;  %s776_s2 = inlined_call_operand.hbm [shape: f32[8,128], index: 2, kind: input, shape index: {}]   ;;  %s777_s3 = inlined_call_operand.vmem [shape: f32[24,1], index: 3, kind: output, shape index: {0}]   ;;  %s778_s4 = inlined_call_operand.hbm [shape: f32[8,128], index: 4, kind: output, shape index: {1}]  }
   0x1   :  { %11 = vsyncpa [#allocation6], 0 }
   0x2   :  { %12 = vsyncpa [#allocation4], 0  ;;  %s649_s15 = smov [#allocation5]   ;;  %s555_s19 = scalar_lea.hbm %s775_s1, 1024 }
   0x3   :  { %s30_s16 = sshll.u32 %s649_s15, 4  ;;  %p556_p0 = scmp.ne.s32.totalorder %s775_s1, %s555_s19  ;;  %s31_s16 = int_to_ptr.vmem [resolvable:$true] %s30_s16 }
   0x4   :  { %p559_p1 = scmp.lt.u32.totalorder %s555_s19, %s775_s1 }
   0x6   :  { %p561_p2 = pnand %p559_p1, %p556_p0 }
   0x8   :  { %564 = shalt.err (!%p561_p2)
}
   0x9   :  { %s565_s24 = scalar_lea.vmem %s31_s16, 1024  ;;  %p570_p4 = scmp.lt.s32.totalorder %s31_s16, %s31_s16 }
   0xa   :  { %p566_p3 = scmp.ne.s32.totalorder %s31_s16, %s565_s24  ;;  %p571_p5 = scmp.lt.s32.totalorder %s565_s24, %s565_s24 }
   0xc   :  { %p572_p6 = por %p571_p5, %p570_p4 }
   0xe   :  { %p573_p7 = pnand %p572_p6, %p566_p3 }
  0x10   :  { %576 = shalt.err (!%p573_p7)
}
  0x11   :  { %s650_s25 = smov 64   ;;  %s651_s26 = smov 4  }
  0x12   :  { %36 = dma.hbm_to_vmem [thread:$0]  %s775_s1, 1024, %s31_s16, [#allocation6], %s650_s25, %s650_s25, %s651_s26  }
  0x13   :  { %s652_s29 = smov [#allocation2]   ;;  %s577_s7 = scalar_lea.hbm %s774_s0, 384 }
  0x14   :  { %s18_s30 = sshll.u32 %s652_s29, 4  ;;  %p578_p8 = scmp.ne.s32.totalorder %s774_s0, %s577_s7  ;;  %s19_s30 = int_to_ptr.vmem [resolvable:$true] %s18_s30 }
  0x15   :  { %p581_p9 = scmp.lt.u32.totalorder %s577_s7, %s774_s0 }
  0x17   :  { %p583_p10 = pnand %p581_p9, %p578_p8 }
  0x19   :  { %586 = shalt.err (!%p583_p10)
}
  0x1a   :  { %s587_s12 = scalar_lea.vmem %s19_s30, 384  ;;  %p592_p12 = scmp.lt.s32.totalorder %s19_s30, %s19_s30 }
  0x1b   :  { %p588_p11 = scmp.ne.s32.totalorder %s19_s30, %s587_s12  ;;  %p593_p13 = scmp.lt.s32.totalorder %s587_s12, %s587_s12 }
  0x1d   :  { %p594_p0 = por %p593_p13, %p592_p12 }
  0x1f   :  { %p595_p1 = pnand %p594_p0, %p588_p11 }
  0x21   :  { %598 = shalt.err (!%p595_p1)
}
  0x22   :  { %s653_s1 = smov 128   ;;  %s654_s13 = smov 8  }
  0x23   :  { %24 = dma.hbm_to_vmem [thread:$0]  %s774_s0, 384, %s19_s30, [#allocation3], %s653_s1, %s653_s1, %s654_s13  }
  0x24   :  { %s655_s16 = smov [#allocation7]   ;;  %s599_s20 = scalar_lea.hbm %s776_s2, 128 }
  0x25   :  { %s43_s17 = sshll.u32 %s655_s16, 4  ;;  %p600_p2 = scmp.ne.s32.totalorder %s776_s2, %s599_s20  ;;  %s44_s17 = int_to_ptr.vmem [resolvable:$true] %s43_s17 }
  0x26   :  { %p603_p3 = scmp.lt.u32.totalorder %s599_s20, %s776_s2 }
  0x28   :  { %p605_p4 = pnand %p603_p3, %p600_p2 }
  0x2a   :  { %608 = shalt.err (!%p605_p4)
}
  0x2b   :  { %s609_s25 = scalar_lea.vmem %s44_s17, 128  ;;  %p614_p6 = scmp.lt.s32.totalorder %s44_s17, %s44_s17 }
  0x2c   :  { %p610_p5 = scmp.ne.s32.totalorder %s44_s17, %s609_s25  ;;  %p615_p7 = scmp.lt.s32.totalorder %s609_s25, %s609_s25 }
  0x2e   :  { %p616_p8 = por %p615_p7, %p614_p6 }
  0x30   :  { %p617_p9 = pnand %p616_p8, %p610_p5 }
  0x32   :  { %620 = shalt.err (!%p617_p9)
}
  0x33   :  { %46 = dma.hbm_to_vmem [thread:$0]  %s776_s2, 128, %s44_s17, [#allocation6]  }
  0x34   :  { %643 = dma.done.wait [#allocation3], 384  }
  0x35   :  { %644 = vsyncadd [#allocation3], 4294966912 }
  0x36   :  { %645 = dma.done.wait [#allocation6], 1152  }
  0x37   :  { %646 = vsyncadd [#allocation6], 4294966144  ;;  %v525_v0 = vld [vmem:[#allocation5] sm:$0xff]   ;;  %v718_v1 = vld [vmem:[#allocation5 + $0x8] sm:$0xff]   ;;  %s656_s2 = smov [#allocation8]  }
  0x38   :  { %457 = vmatprep.subr.bf16.mxu0 %v525_v0  ;;  %477 = vmatprep.subr.bf16.mxu1 %v525_v0  ;;  %v527_v2 = vld [vmem:[#allocation5 + $0x10] sm:$0xff]   ;;  %v57_v3 = vld [vmem:[#allocation7] sm:$0xff]  ;;  %v528_v6 = vld [vmem:[#allocation5 + $0x18] sm:$0xff]   ;;  %s406_s27 = sshll.u32 %s656_s2, 4  ;;  %s407_s27 = int_to_ptr.vmem [resolvable:$true] %s406_s27 }
  0x39   :  { %458 = vmatpush3.bf16.xpose.msra.mxu0 %v525_v0  ;;  %478 = vmatpush3.bf16.xpose.msra.mxu1 %v525_v0  ;;  %v58_v4 = vadd.f32 0.5, %v57_v3  ;;  %v529_v8 = vld [vmem:[#allocation5 + $0x20] sm:$0xff]   ;;  %v530_v10 = vld [vmem:[#allocation5 + $0x28] sm:$0xff]   ;;  %v67_v12 = vld [vmem:[#allocation2 + $0x8] sm:$0xff]  ;;  %s621_s28 = scalar_lea.vmem %s407_s27, 128  ;;  %p626_p11 = scmp.lt.s32.totalorder %s407_s27, %s407_s27 }
  0x3a   :  { %459 = vmatprep.subr.bf16.mxu0 %v718_v1  ;;  %479 = vmatprep.subr.bf16.mxu1 %v718_v1  ;;  %v66_v11 = vld [vmem:[#allocation2] sm:$0xff]  ;;  %v531_v18 = vld [vmem:[#allocation5 + $0x30] sm:$0xff]   ;;  %v532_v20 = vld [vmem:[#allocation5 + $0x38] sm:$0xff]   ;;  %p622_p10 = scmp.ne.s32.totalorder %s407_s27, %s621_s28  ;;  %p627_p12 = scmp.lt.s32.totalorder %s621_s28, %s621_s28 }
  0x3b   :  { %v418_v5 = vmul.f32 -1.442695, %v58_v4  ;;  %v68_v21 = vld [vmem:[#allocation2 + $0x10] sm:$0xff] }
  0x3c   :  { %p628_p13 = por %p627_p12, %p626_p11 }
  0x3d   :  { %533 = vpow2.f32 %v418_v5 }
  0x3e   :  { %p629_p0 = pnand %p628_p13, %p622_p10 }
  0x41   :  { %460 = vmatpush3.bf16.xpose.msra.mxu0 %v718_v1  ;;  %480 = vmatpush3.bf16.xpose.msra.mxu1 %v718_v1 }
  0x42   :  { %461 = vmatprep.subr.bf16.mxu0 %v527_v2  ;;  %481 = vmatprep.subr.bf16.mxu1 %v527_v2 }
  0x47   :  { %v534_v7 = vpop.eup %533 }
  0x48   :  { %v62_v9 = vadd.f32 1.0, %v534_v7 }
  0x49   :  { %462 = vmatpush3.bf16.xpose.msra.mxu0 %v527_v2  ;;  %482 = vmatpush3.bf16.xpose.msra.mxu1 %v527_v2 }
  0x4a   :  { %463 = vmatprep.subr.bf16.mxu0 %v528_v6  ;;  %483 = vmatprep.subr.bf16.mxu1 %v528_v6  ;;  %535 = vrcp.f32 %v62_v9 }
  0x51   :  { %464 = vmatpush3.bf16.xpose.msra.mxu0 %v528_v6  ;;  %484 = vmatpush3.bf16.xpose.msra.mxu1 %v528_v6 }
  0x52   :  { %465 = vmatprep.subr.bf16.mxu0 %v529_v8  ;;  %485 = vmatprep.subr.bf16.mxu1 %v529_v8 }
  0x54   :  { %v724_v13 = vpop.eup %535 }
  0x55   :  { %v727_v14 = vmul.f32 %v724_v13, %v66_v11  ;;  %v730_v15 = vmul.f32 %v724_v13, %v67_v12  ;;  %65 = vst [vmem:[#allocation8] sm:$0xff] %v724_v13  ;;  %v736_v22 = vmul.f32 %v724_v13, %v68_v21 }
  0x57   :  { %v81_v16 = vsub.f32 %v66_v11, %v727_v14  ;;  %v82_v17 = vsub.f32 %v67_v12, %v730_v15  ;;  %v83_v23 = vsub.f32 %v68_v21, %v736_v22 }
  0x59   :  { %466 = vmatpush3.bf16.xpose.msra.mxu0 %v529_v8  ;;  %486 = vmatpush3.bf16.xpose.msra.mxu1 %v529_v8  ;;  %v84_v19 = vpack.c.bf16 %v82_v17, %v81_v16  ;;  %v85_v24 = vpack.c.bf16 %v83_v23, %v83_v23 }
  0x5a   :  { %467 = vmatprep.subr.bf16.mxu0 %v530_v10  ;;  %487 = vmatprep.subr.bf16.mxu1 %v530_v10 }
  0x5b   :  { %473 = vmatprep.mubr.bf16.mxu0 %v84_v19 }
  0x61   :  { %468 = vmatpush3.bf16.xpose.msra.mxu0 %v530_v10  ;;  %488 = vmatpush3.bf16.xpose.msra.mxu1 %v530_v10 }
  0x62   :  { %469 = vmatprep.subr.bf16.mxu0 %v531_v18  ;;  %489 = vmatprep.subr.bf16.mxu1 %v531_v18 }
  0x69   :  { %470 = vmatpush3.bf16.xpose.msra.mxu0 %v531_v18  ;;  %490 = vmatpush3.bf16.xpose.msra.mxu1 %v531_v18 }
  0x6a   :  { %471 = vmatprep.subr.bf16.mxu0 %v532_v20  ;;  %491 = vmatprep.subr.bf16.mxu1 %v532_v20 }
  0x71   :  { %472 = vmatpush3.bf16.xpose.msra.mxu0 %v532_v20  ;;  %492 = vmatpush3.bf16.xpose.msra.mxu1 %v532_v20 }
  0x72   :  { %497 = vmatprep.subr.bf16.mxu0 %v525_v0 }
  0x78   :  { %474 = vmatmul.mubr.bf16.vlgmr.msra.gmra.mrb[0].mxu0 %v85_v24 }
  0x79   :  { %498 = vmatpush3.bf16.xpose.msra.mxu0 %v525_v0 }
  0x7a   :  { %499 = vmatprep.subr.bf16.mxu0 %v718_v1 }
  0x81   :  { %500 = vmatpush3.bf16.xpose.msra.mxu0 %v718_v1 }
  0x82   :  { %501 = vmatprep.subr.bf16.mxu0 %v527_v2 }
  0x89   :  { %502 = vmatpush3.bf16.xpose.msra.mxu0 %v527_v2 }
  0x8a   :  { %503 = vmatprep.subr.bf16.mxu0 %v528_v6 }
  0x91   :  { %504 = vmatpush3.bf16.xpose.msra.mxu0 %v528_v6 }
  0x92   :  { %505 = vmatprep.subr.bf16.mxu0 %v529_v8 }
  0x99   :  { %506 = vmatpush3.bf16.xpose.msra.mxu0 %v529_v8 }
  0x9a   :  { %507 = vmatprep.subr.bf16.mxu0 %v530_v10 }
  0xa1   :  { %508 = vmatpush3.bf16.xpose.msra.mxu0 %v530_v10 }
  0xa2   :  { %509 = vmatprep.subr.bf16.mxu0 %v531_v18 }
  0xa9   :  { %510 = vmatpush3.bf16.xpose.msra.mxu0 %v531_v18 }
  0xaa   :  { %511 = vmatprep.subr.bf16.mxu0 %v532_v20 }
  0xb1   :  { %512 = vmatpush3.bf16.xpose.msra.mxu0 %v532_v20 }
 0x14b   :  { %v475_v25 = vpop.f32.mrb[0].mxu0 }
 0x14c   :  { %202 = vadd.xlane.f32.xlu1 %v475_v25  ;;  %v184_v26 = vpop.f32.mrb[1].mxu0  ;;  %v206_v32 = vand.u32 2147483647, %v475_v25 }
 0x14d   :  { %198 = vadd.xlane.f32.xlu0 %v184_v26  ;;  %v476_v27 = vpop.f32.mrb[2].mxu0  ;;  %v204_v34 = vand.u32 2147483647, %v184_v26 }
 0x14e   :  { %v187_v28 = vpop.f32.mrb[3].mxu0 }
 0x14f   :  { %v205_v38 = vand.u32 2147483647, %v187_v28 }
 0x151   :  { %200 = vadd.xlane.f32.xlu0 %v187_v28 }
 0x1d9   :  { %v203_v29 = vpop.xlane.xlu1 %202 }
 0x1da   :  { %537 = vrcp.f32 %v203_v29  ;;  %v199_v30 = vpop.xlane.xlu0 %198 }
 0x1db   :  { %539 = vrcp.f32 %v199_v30 }
 0x1de   :  { %v201_v31 = vpop.xlane.xlu0 %200 }
 0x1df   :  { %541 = vrcp.f32 %v201_v31 }
 0x1e4   :  { %v538_v33 = vpop.eup %537 }
 0x1e5   :  { %v540_v35 = vpop.eup %539  ;;  %v212_v36 = vmul.f32 %v538_v33, %v206_v32 }
 0x1e6   :  { %v210_v37 = vmul.f32 %v540_v35, %v204_v34 }
 0x1e7   :  { %v215_v40 = vmul.f32 %v724_v13, %v212_v36 }
 0x1e8   :  { %v213_v42 = vmul.f32 %v724_v13, %v210_v37 }
 0x1e9   :  { %v542_v39 = vpop.eup %541  ;;  %v230_v44 = vsub.f32 %v212_v36, %v215_v40 }
 0x1ea   :  { %v211_v41 = vmul.f32 %v542_v39, %v205_v38  ;;  %v228_v45 = vsub.f32 %v210_v37, %v213_v42 }
 0x1eb   :  { %v232_v48 = vpack.c.bf16 %v230_v44, %v230_v44 }
 0x1ec   :  { %v214_v43 = vmul.f32 %v724_v13, %v211_v41 }
 0x1ee   :  { %v229_v46 = vsub.f32 %v211_v41, %v214_v43 }
 0x1f0   :  { %v231_v47 = vpack.c.bf16 %v229_v46, %v228_v45 }
 0x1f2   :  { %493 = vmatprep.mubr.bf16.mxu1 %v231_v47 }
 0x1f3   :  { %494 = vmatmul.mubr.bf16.vlgmr.msra.gmra.mrb[0].mxu1 %v232_v48 }
 0x2c6   :  { %v495_v49 = vpop.f32.mrb[0].mxu1 }
 0x2c7   :  { %v267_v50 = vpop.f32.mrb[1].mxu1  ;;  %v289_v61 = vand.u32 2147483647, %v495_v49 }
 0x2c8   :  { %281 = vadd.xlane.f32.xlu1 %v267_v50  ;;  %v496_v51 = vpop.f32.mrb[2].mxu1  ;;  %v287_v56 = vand.u32 2147483647, %v267_v50 }
 0x2c9   :  { %v270_v52 = vpop.f32.mrb[3].mxu1 }
 0x2ca   :  { %283 = vadd.xlane.f32.xlu0 %v270_v52  ;;  %v288_v58 = vand.u32 2147483647, %v270_v52 }
 0x2cc   :  { %285 = vadd.xlane.f32.xlu1 %v495_v49 }
 0x355   :  { %v282_v53 = vpop.xlane.xlu1 %281 }
 0x356   :  { %543 = vrcp.f32 %v282_v53 }
 0x357   :  { %v284_v54 = vpop.xlane.xlu0 %283 }
 0x358   :  { %545 = vrcp.f32 %v284_v54 }
 0x359   :  { %v286_v55 = vpop.xlane.xlu1 %285 }
 0x35a   :  { %547 = vrcp.f32 %v286_v55 }
 0x360   :  { %v544_v57 = vpop.eup %543 }
 0x361   :  { %v293_v59 = vmul.f32 %v544_v57, %v287_v56 }
 0x362   :  { %v546_v60 = vpop.eup %545 }
 0x363   :  { %v294_v62 = vmul.f32 %v546_v60, %v288_v58  ;;  %v296_v63 = vmul.f32 %v724_v13, %v293_v59 }
 0x364   :  { %v548_v0 = vpop.eup %547 }
 0x365   :  { %v297_v1 = vmul.f32 %v724_v13, %v294_v62  ;;  %v295_v2 = vmul.f32 %v548_v0, %v289_v61  ;;  %v311_v3 = vsub.f32 %v293_v59, %v296_v63 }
 0x367   :  { %v312_v4 = vsub.f32 %v294_v62, %v297_v1  ;;  %v298_v5 = vmul.f32 %v724_v13, %v295_v2 }
 0x369   :  { %v314_v6 = vpack.c.bf16 %v312_v4, %v311_v3  ;;  %v313_v7 = vsub.f32 %v295_v2, %v298_v5 }
 0x36b   :  { %513 = vmatprep.mubr.bf16.mxu0 %v314_v6  ;;  %v315_v8 = vpack.c.bf16 %v313_v7, %v313_v7 }
 0x36d   :  { %514 = vmatmul.mubr.bf16.vlgmr.msra.gmra.mrb[4].mxu0 %v315_v8 }
 0x440   :  { %v515_v9 = vpop.f32.mrb[4].mxu0 }
 0x441   :  { %v350_v10 = vpop.f32.mrb[5].mxu0  ;;  %v372_v25 = vand.u32 2147483647, %v515_v9 }
 0x442   :  { %364 = vadd.xlane.f32.xlu0 %v350_v10  ;;  %v516_v11 = vpop.f32.mrb[6].mxu0  ;;  %v370_v19 = vand.u32 2147483647, %v350_v10 }
 0x443   :  { %v353_v12 = vpop.f32.mrb[7].mxu0 }
 0x444   :  { %366 = vadd.xlane.f32.xlu1 %v353_v12  ;;  %v371_v21 = vand.u32 2147483647, %v353_v12 }
 0x446   :  { %368 = vadd.xlane.f32.xlu0 %v515_v9 }
 0x448   :  { %216 = vadd.xlane.f32.xlu1 %v213_v42 }
 0x44a   :  { %218 = vadd.xlane.f32.xlu0 %v214_v43 }
 0x44c   :  { %220 = vadd.xlane.f32.xlu1 %v215_v40 }
 0x44e   :  { %72 = vadd.xlane.f32.xlu0 %v727_v14 }
 0x450   :  { %74 = vadd.xlane.f32.xlu1 %v730_v15 }
 0x452   :  { %76 = vadd.xlane.f32.xlu0 %v736_v22 }
 0x454   :  { %299 = vadd.xlane.f32.xlu1 %v296_v63 }
 0x456   :  { %301 = vadd.xlane.f32.xlu0 %v297_v1 }
 0x458   :  { %303 = vadd.xlane.f32.xlu1 %v298_v5 }
 0x4cf   :  { %v365_v16 = vpop.xlane.xlu0 %364 }
 0x4d0   :  { %549 = vrcp.f32 %v365_v16 }
 0x4d1   :  { %v367_v17 = vpop.xlane.xlu1 %366 }
 0x4d2   :  { %551 = vrcp.f32 %v367_v17 }
 0x4d3   :  { %v369_v18 = vpop.xlane.xlu0 %368 }
 0x4d4   :  { %553 = vrcp.f32 %v369_v18 }
 0x4da   :  { %v550_v20 = vpop.eup %549 }
 0x4db   :  { %v376_v23 = vmul.f32 %v550_v20, %v370_v19 }
 0x4dc   :  { %v552_v24 = vpop.eup %551 }
 0x4dd   :  { %v379_v14 = vmul.f32 %v724_v13, %v376_v23  ;;  %v377_v15 = vmul.f32 %v552_v24, %v371_v21 }
 0x4de   :  { %v554_v26 = vpop.eup %553 }
 0x4df   :  { %382 = vadd.xlane.f32.xlu0 %v379_v14  ;;  %v380_v22 = vmul.f32 %v724_v13, %v377_v15  ;;  %v378_v27 = vmul.f32 %v554_v26, %v372_v25 }
 0x4e1   :  { %384 = vadd.xlane.f32.xlu1 %v380_v22  ;;  %v381_v28 = vmul.f32 %v724_v13, %v378_v27 }
 0x4e3   :  { %386 = vadd.xlane.f32.xlu0 %v381_v28 }
 0x4e4   :  { %632 = shalt.err (!%p629_p0)
}
 0x4e5   :  { %s633_s5 = scalar_lea.hbm %s778_s4, 128 }
 0x4e6   :  { %p634_p1 = scmp.ne.s32.totalorder %s778_s4, %s633_s5  ;;  %p637_p2 = scmp.lt.u32.totalorder %s633_s5, %s778_s4 }
 0x4e8   :  { %p639_p3 = pnand %p637_p2, %p634_p1 }
 0x4ea   :  { %642 = shalt.err (!%p639_p3)
}
 0x4eb   :  { %409 = dma.vmem_to_hbm [thread:$0]  %s407_s27, 128, %s778_s4, [#allocation4]   ;;  %v217_v13 = vpop.xlane.xlu1 %216  ;;  %v219_v29 = vpop.xlane.xlu0 %218  ;;  %vm394_vm0 = vcmask 7168  }
 0x4ec   :  { %v222_v36 = vmul.f32 0.9, %v217_v13  ;;  %v223_v39 = vmul.f32 0.9, %v219_v29 }
 0x4ef   :  { %v221_v30 = vpop.xlane.xlu1 %220  ;;  %v73_v31 = vpop.xlane.xlu0 %72 }
 0x4f0   :  { %v225_v40 = vadd.f32 %v222_v36, %v73_v31  ;;  %v224_v42 = vmul.f32 0.9, %v221_v30 }
 0x4f3   :  { %v75_v32 = vpop.xlane.xlu1 %74  ;;  %v77_v33 = vpop.xlane.xlu0 %76 }
 0x4f4   :  { %v226_v44 = vadd.f32 %v223_v39, %v75_v32  ;;  %v227_v49 = vadd.f32 %v224_v42, %v77_v33 }
 0x4f7   :  { %v300_v34 = vpop.xlane.xlu1 %299  ;;  %v302_v35 = vpop.xlane.xlu0 %301 }
 0x4f8   :  { %v305_v37 = vmul.f32 0.81, %v300_v34  ;;  %v306_v41 = vmul.f32 0.81, %v302_v35 }
 0x4fa   :  { %v308_v45 = vadd.f32 %v305_v37, %v225_v40  ;;  %v309_v50 = vadd.f32 %v306_v41, %v226_v44 }
 0x4fb   :  { %v304_v38 = vpop.xlane.xlu1 %303 }
 0x4fc   :  { %v307_v46 = vmul.f32 0.81, %v304_v38 }
 0x4fe   :  { %v310_v54 = vadd.f32 %v307_v46, %v227_v49 }
 0x56c   :  { %v383_v43 = vpop.xlane.xlu0 %382 }
 0x56d   :  { %v388_v47 = vmul.f32 0.729, %v383_v43 }
 0x56e   :  { %v385_v48 = vpop.xlane.xlu1 %384 }
 0x56f   :  { %v391_v51 = vadd.f32 %v388_v47, %v308_v45  ;;  %v389_v52 = vmul.f32 0.729, %v385_v48 }
 0x570   :  { %v387_v53 = vpop.xlane.xlu0 %386 }
 0x571   :  { %395 = vst.msk [vmem:[%s777_s3] sm:$0xff] %vm394_vm0, %v391_v51  ;;  %v392_v55 = vadd.f32 %v389_v52, %v309_v50  ;;  %v390_v56 = vmul.f32 0.729, %v387_v53 }
 0x573   :  { %396 = vst.msk [vmem:[%s777_s3 + $0x8] sm:$0xff] %vm394_vm0, %v392_v55  ;;  %v393_v57 = vadd.f32 %v390_v56, %v310_v54 }
 0x575   :  { %397 = vst.msk [vmem:[%s777_s3 + $0x10] sm:$0xff] %vm394_vm0, %v393_v57 }
 0x576   :  { %647 = dma.done.wait [#allocation4], 128  }
 0x577   :  { %648 = vsyncadd [#allocation4], 4294967168 }
 0x578   :  { %415 = vsyncpa [#allocation3], 1 }
 0x579   :  { %416 = vsyncpa [#allocation6], 1 }
 0x57a   :  { %417 = vsyncpa [#allocation4], 1 }

</bundles_post_ra>
